<compile_context>
chip_gen: v7x
topology: tpu7x:2x2x1
jax: 0.10.0
libtpu: 0.0.40
codegen_flags: <defaults>
</compile_context>

<pallas_src>
import jax
import jax.numpy as jnp
from jax.experimental import pallas as pl
from jax.experimental.pallas import tpu as pltpu

_LANE = 128
_SUBLANE = 8
_NEG_FILL = -1e30  # padded label rows -> exp underflows to exactly 0


def _round_up(x, m):
    return (x + m - 1) // m * m


def _text_classifier_kernel(xt_ref, wt_ref, w2_ref, b_ref, o_ref):
    # xt_ref: (E, TB)        activations (caller dtype), batch on lanes
    # wt_ref: (M_pad, E)     bf16 W^T, zero-padded rows beyond M
    # w2_ref: (L_sub, M_pad) bf16 middle2tag.weight, padded label rows zero
    # b_ref:  (L_sub, 1)     f32 (b2 + bias) folded, padded label rows -1e30
    # o_ref:  (L_sub, TB)    bf16 softmax probabilities over the label (sublane) axis
    xt = xt_ref[...].astype(wt_ref.dtype)                       # bf16 MXU inputs
    h = jnp.dot(wt_ref[...], xt, preferred_element_type=jnp.float32)   # (M_pad, TB)
    h = jnp.maximum(h, 0.0)                                      # relu in f32 (VPU)

    logits = jnp.dot(w2_ref[...], h.astype(w2_ref.dtype),
                     preferred_element_type=jnp.float32)         # (L_sub, TB)
    logits = logits + b_ref[...]                                 # lane-broadcast bias

    m = jnp.max(logits, axis=0, keepdims=True)                   # sublane reduce (XLU)
    e = jnp.exp(logits - m)
    denom = jnp.sum(e, axis=0, keepdims=True)
    # Exact reciprocal: perf-neutral at this size, keeps per-row sums at ~f32 accuracy.
    o_ref[...] = (e * pl.reciprocal(denom, approx=False)).astype(o_ref.dtype)


def prepare_params(W, W2, b2, bias, weight_dtype=jnp.bfloat16):
    """One-time padding / transpose / dtype cast of the module parameters."""
    E, M = W.shape
    L = W2.shape[0]
    M_pad = _round_up(M, _LANE)      # 600 -> 640: full-width MXU tiles
    L_sub = _round_up(L, _SUBLANE)   # labels live on the sublane axis (8 -> 8)

    WT_p = jnp.zeros((M_pad, E), weight_dtype).at[:M, :].set(
        W.T.astype(weight_dtype))
    W2_p = jnp.zeros((L_sub, M_pad), weight_dtype).at[:L, :M].set(
        W2.astype(weight_dtype))
    b_p = jnp.full((L_sub, 1), _NEG_FILL, jnp.float32).at[:L, 0].set(
        (b2 + bias).astype(jnp.float32))
    return WT_p, W2_p, b_p


def text_classification_forward(sent_vectors, WT_p, W2_p, b_p, *,
                                label_num, row_tile=1024):
    """sent_vectors: (E,) or (B, E). Returns f32 (label_num,) or (B, label_num)."""
    squeeze = sent_vectors.ndim == 1
    x = sent_vectors.reshape(1, -1) if squeeze else sent_vectors
    B, E = x.shape
    M_pad = WT_p.shape[0]
    L_sub = W2_p.shape[0]

    # Batch lives on the lane axis -> tile must be a multiple of 128.
    tb = min(_round_up(row_tile, _LANE), _round_up(B, _LANE))
    if B > _LANE:
        # Keep >=2 grid steps so v7x's two TensorCores both get work.
        tb = min(tb, _round_up(pl.cdiv(B, 2), _LANE))
    B_pad = _round_up(B, tb)

    # Keep caller dtype (kernel casts to bf16 for the MXU); transpose is tiny plumbing.
    xt = x.T
    if B_pad != B:
        xt = jnp.pad(xt, ((0, 0), (0, B_pad - B)))

    grid = (B_pad // tb,)
    flops = 2 * B_pad * (E * M_pad + M_pad * L_sub)
    bytes_accessed = (xt.size * xt.dtype.itemsize
                      + WT_p.size * WT_p.dtype.itemsize
                      + W2_p.size * W2_p.dtype.itemsize
                      + b_p.size * 4
                      + L_sub * B_pad * 2)

    # VMEM per step (tb=1024): ~0.3 MiB tiles + ~4 MiB intermediates -> well under all
    # default scoped limits. For row_tile >= 8192 on v5e add vmem_limit_bytes=...
    out = pl.pallas_call(
        _text_classifier_kernel,
        out_shape=jax.ShapeDtypeStruct((L_sub, B_pad), jnp.bfloat16),
        grid=grid,
        in_specs=[
            pl.BlockSpec((E, tb), lambda i: (0, i)),           # batch tile (lane-dense)
            pl.BlockSpec((M_pad, E), lambda i: (0, 0)),        # resident W^T
            pl.BlockSpec((L_sub, M_pad), lambda i: (0, 0)),    # resident W2
            pl.BlockSpec((L_sub, 1), lambda i: (0, 0)),        # folded bias column
        ],
        out_specs=pl.BlockSpec((L_sub, tb), lambda i: (0, i)),
        compiler_params=pltpu.CompilerParams(
            dimension_semantics=("parallel",)),                # megacore split on v7x
        cost_estimate=pl.CostEstimate(
            flops=flops,
            transcendentals=L_sub * B_pad,
            bytes_accessed=bytes_accessed),
    )(xt, WT_p, W2_p, b_p)

    # Tiny (L_sub, B_pad) bf16 slab: slice + transpose + f32 upcast is negligible.
    out = out[:label_num, :B].T.astype(jnp.float32)
    return out[0] if squeeze else out


if __name__ == "__main__":
    embedding_dim = 32
    middle_dim = 600   # fixed in the module's __init__
    label_num = 8
    batch = 200        # pads to 256 lanes -> 2 grid steps of tb=128 (exercises megacore path)

    key = jax.random.PRNGKey(0)
    k_x, k_w, k_w2, k_b2 = jax.random.split(key, 4)

    # Parameters (deterministic synthetic init, matching shapes from __init__):
    W = jax.random.normal(k_w, (embedding_dim, middle_dim), dtype=jnp.float32)
    W2 = jax.random.normal(k_w2, (label_num, middle_dim), dtype=jnp.float32) * 0.05
    b2 = jax.random.normal(k_b2, (label_num,), dtype=jnp.float32) * 0.05
    bias = jnp.ones((label_num,), dtype=jnp.float32)

    # One-time padding / transpose / bf16 cast (outside the per-call path).
    WT_p, W2_p, b_p = prepare_params(W, W2, b2, bias)

    xs = jax.random.normal(k_x, (batch, embedding_dim), dtype=jnp.float32)

    fwd = jax.jit(text_classification_forward,
                  static_argnames=("label_num", "row_tile"))

    out = fwd(xs, WT_p, W2_p, b_p, label_num=label_num)
    out = jax.block_until_ready(out)

    # Single-vector path (matches the torch module's forward signature).
    out1 = fwd(xs[0], WT_p, W2_p, b_p, label_num=label_num)
    out1 = jax.block_until_ready(out1)

    # Reference in plain JAX with matching bf16 weight/activation quantization.
    Wq = W.astype(jnp.bfloat16).astype(jnp.float32)
    W2q = W2.astype(jnp.bfloat16).astype(jnp.float32)
    xq = xs.astype(jnp.bfloat16).astype(jnp.float32)
    h_ref = jnp.maximum(xq @ Wq, 0.0)
    hq = h_ref.astype(jnp.bfloat16).astype(jnp.float32)
    logits_ref = hq @ W2q.T + b2 + bias
    ref = jax.nn.softmax(logits_ref, axis=-1)

    assert out.shape == (batch, label_num)
    assert out1.shape == (label_num,)
    # bf16 output rounding (~0.4% rel) dominates the tolerance budget.
    assert jnp.allclose(out, ref, atol=1e-2, rtol=1e-2)
    assert jnp.allclose(out1, ref[0], atol=1e-2, rtol=1e-2)
    assert jnp.allclose(jnp.sum(out, axis=-1), 1.0, atol=1e-2)

    print("KERNEL_OK")
</pallas_src>

<mosaic_0001>
module attributes {stable_mosaic.version = 11 : i64} {
  func.func @_text_classifier_kernel(%arg0: i32, %arg1: memref<32x128xf32, #tpu.memory_space<vmem>>, %arg2: memref<640x32xbf16, #tpu.memory_space<vmem>>, %arg3: memref<8x640xbf16, #tpu.memory_space<vmem>>, %arg4: memref<8x1xf32, #tpu.memory_space<vmem>>, %arg5: memref<8x128xbf16, #tpu.memory_space<vmem>>) attributes {dimension_semantics = [#tpu.dimension_semantics<parallel>], iteration_bounds = array<i64: 2>, scalar_prefetch = 0 : i64, scratch_operands = 0 : i64, tpu.core_type = #tpu.core_type<tc>, window_params = [{transform_indices = @transform_0, window_bounds = array<i64: 32, 128>}, {pipeline_mode = #tpu.pipeline_mode<synchronous>, transform_indices = @transform_1, window_bounds = array<i64: 640, 32>}, {pipeline_mode = #tpu.pipeline_mode<synchronous>, transform_indices = @transform_2, window_bounds = array<i64: 8, 640>}, {pipeline_mode = #tpu.pipeline_mode<synchronous>, transform_indices = @transform_3, window_bounds = array<i64: 8, 1>}, {transform_indices = @transform_4, window_bounds = array<i64: 8, 128>}]} {
    %c0 = arith.constant 0 : index
    %c0_0 = arith.constant 0 : index
    %0 = vector.load %arg1[%c0, %c0_0] : memref<32x128xf32, #tpu.memory_space<vmem>>, vector<32x128xf32>
    %1 = arith.truncf %0 : vector<32x128xf32> to vector<32x128xbf16>
    %c0_1 = arith.constant 0 : index
    %c0_2 = arith.constant 0 : index
    %2 = vector.load %arg2[%c0_1, %c0_2] : memref<640x32xbf16, #tpu.memory_space<vmem>>, vector<640x32xbf16>
    %cst = arith.constant dense<0.000000e+00> : vector<640x128xf32>
    %3 = tpu.matmul %2, %1, %cst {dimension_numbers = #tpu.dot_dimension_numbers<[1], [0], [0], [1], [0, 0, 1, 1], [], []>} : vector<640x32xbf16>, vector<32x128xbf16>, vector<640x128xf32> -> vector<640x128xf32>
    %cst_3 = arith.constant 0.000000e+00 : f32
    %4 = vector.broadcast %cst_3 : f32 to vector<640x128xf32>
    %5 = arith.maximumf %3, %4 : vector<640x128xf32>
    %c0_4 = arith.constant 0 : index
    %c0_5 = arith.constant 0 : index
    %6 = vector.load %arg3[%c0_4, %c0_5] : memref<8x640xbf16, #tpu.memory_space<vmem>>, vector<8x640xbf16>
    %7 = arith.truncf %5 : vector<640x128xf32> to vector<640x128xbf16>
    %cst_6 = arith.constant dense<0.000000e+00> : vector<8x128xf32>
    %8 = tpu.matmul %6, %7, %cst_6 {dimension_numbers = #tpu.dot_dimension_numbers<[1], [0], [0], [1], [0, 0, 1, 1], [], []>} : vector<8x640xbf16>, vector<640x128xbf16>, vector<8x128xf32> -> vector<8x128xf32>
    %c0_7 = arith.constant 0 : index
    %c0_8 = arith.constant 0 : index
    %9 = vector.load %arg4[%c0_7, %c0_8] : memref<8x1xf32, #tpu.memory_space<vmem>>, vector<8x1xf32>
    %10 = vector.broadcast %9 : vector<8x1xf32> to vector<8x128xf32>
    %11 = arith.addf %8, %10 : vector<8x128xf32>
    %cst_9 = arith.constant dense<0xFF800000> : vector<128xf32>
    %12 = vector.multi_reduction <maximumf>, %11, %cst_9 [0] : vector<8x128xf32> to vector<128xf32>
    %13 = vector.shape_cast %12 : vector<128xf32> to vector<1x128xf32>
    %14 = vector.broadcast %13 : vector<1x128xf32> to vector<8x128xf32>
    %15 = arith.subf %11, %14 : vector<8x128xf32>
    %16 = math.exp %15 : vector<8x128xf32>
    %cst_10 = arith.constant dense<0.000000e+00> : vector<128xf32>
    %17 = vector.multi_reduction <add>, %16, %cst_10 [0] : vector<8x128xf32> to vector<128xf32>
    %18 = vector.shape_cast %17 : vector<128xf32> to vector<1x128xf32>
    %19 = tpu.reciprocal %18 : vector<1x128xf32> -> vector<1x128xf32>
    %20 = vector.broadcast %19 : vector<1x128xf32> to vector<8x128xf32>
    %21 = arith.mulf %16, %20 : vector<8x128xf32>
    %22 = arith.truncf %21 : vector<8x128xf32> to vector<8x128xbf16>
    %c0_11 = arith.constant 0 : index
    %c0_12 = arith.constant 0 : index
    %23 = vector.load %arg5[%c0_11, %c0_12] : memref<8x128xbf16, #tpu.memory_space<vmem>>, vector<8x128xbf16>
    tpu.vector_store %arg5[%c0_11, %c0_12], %22 {strides = array<i32>} : memref<8x128xbf16, #tpu.memory_space<vmem>>, vector<8x128xbf16>,
    return
  }
  func.func @transform_0(%arg0: i32) -> (i32, i32) {
    %c0_i32 = arith.constant 0 : i32
    %c0_i32_0 = arith.constant 0 : i32
    return %c0_i32, %arg0 : i32, i32
  }
  func.func @transform_1(%arg0: i32) -> (i32, i32) {
    %c0_i32 = arith.constant 0 : i32
    %c0_i32_0 = arith.constant 0 : i32
    %c0_i32_1 = arith.constant 0 : i32
    return %c0_i32, %c0_i32_0 : i32, i32
  }
  func.func @transform_2(%arg0: i32) -> (i32, i32) {
    %c0_i32 = arith.constant 0 : i32
    %c0_i32_0 = arith.constant 0 : i32
    %c0_i32_1 = arith.constant 0 : i32
    return %c0_i32, %c0_i32_0 : i32, i32
  }
  func.func @transform_3(%arg0: i32) -> (i32, i32) {
    %c0_i32 = arith.constant 0 : i32
    %c0_i32_0 = arith.constant 0 : i32
    %c0_i32_1 = arith.constant 0 : i32
    return %c0_i32, %c0_i32_0 : i32, i32
  }
  func.func @transform_4(%arg0: i32) -> (i32, i32) {
    %c0_i32 = arith.constant 0 : i32
    %c0_i32_0 = arith.constant 0 : i32
    return %c0_i32, %arg0 : i32, i32
  }
}

</mosaic_0001>

<bundles_post_ra>
// kernel: text_classification_forward.1
= control target key start
LH: loop header
LB: loop body
LE: loop exit
PB: predicated region body
PF: predicated region fallthrough
CT: control target
= control target key end

     0   :  { %s1776_s15 = smov 0   ;;  %s1778_s16 = smov 0   ;;  %s2068_s0 = inlined_call_operand.vmem [shape: f32[32,256], index: 0, kind: input, shape index: {}]   ;;  %s2069_s1 = inlined_call_operand.vmem [shape: bf16[640,32], index: 1, kind: input, shape index: {}]   ;;  %s2070_s2 = inlined_call_operand.vmem [shape: bf16[8,640], index: 2, kind: input, shape index: {}]   ;;  %s2071_s3 = inlined_call_operand.vmem [shape: f32[8,1], index: 3, kind: input, shape index: {}]   ;;  %s2072_s4 = inlined_call_operand.vmem [shape: bf16[8,256], index: 4, kind: output, shape index: {}]  }
   0x1   :  { %s1780_s17 = smov 0  }
   0x2 LB: > { %s1348_s18 = sadd.s32 4294967295, %s1746_s17   ;;  %s1793_s19 = sadd.s32 1, %s1746_s17   ;;  %s1746_s17 = sphi %s1780_s17, %s2075_s17   ;;  %s1742_s16 = sphi %s1778_s16, %s2074_s16   ;;  %s1738_s15 = sphi %s1776_s15, %s2073_s15  }
   0x3   : > { %s18_s20 = ssub.s32 %s1746_s17, %s1793_s19  ;;  %s21_s21 = sadd.s32 1, %s1742_s16 }
   0x4   : > { %p19_p0 = scmp.eq.s32.totalorder %s18_s20, 0  ;;  %p28_p1 = scmp.ne.s32.totalorder %s1742_s16, %s1738_s15 }
   0x5   : > { %p29_p2 = scmp.eq.s32.totalorder %s1746_s17, 0  ;;  %p1351_p4 = scmp.ge.s32.totalorder %s1746_s17, 2 }
   0x6   : > { %s1802_s22 = scalar_select %p19_p0, %s1742_s16, %s21_s21  }
   0x7   : > { %p30_p3 = por %p29_p2, %p28_p1  ;;  %152 = sbr.rel (%p1351_p4) target bundleno = 21 (0x15), region = 28 }
   0xe   : > { %155 = sbr.rel (!%p30_p3) target bundleno = 21 (0x15), region = 32  ;;  %s157_s23 = sand.u32 (%p30_p3), 1, %s1742_s16  }
   0xf   : > { %s1353_s24 = sshll.u32 (%p30_p3), %s1746_s17, 3  ;;  %s1352_s25 = sshll.u32 (%p30_p3), %s157_s23, 5 }
  0x10   : > { %s161_s28 = scalar_lea.vmem (%p30_p3), %s2068_s0, %s1353_s24  ;;  %s159_s29 = scalar_lea.vmem (%p30_p3), [#allocation2], %s1352_s25 }
  0x11   : > { %v195_v0 = vld [vmem:[%s161_s28] sm:$0xff] (%p30_p3)  ;;  %v197_v1 = vld [vmem:[%s161_s28 + $0x10] sm:$0xff] (%p30_p3) }
  0x12   : > { %v199_v2 = vld [vmem:[%s161_s28 + $0x20] sm:$0xff] (%p30_p3)  ;;  %196 = vst [vmem:[%s159_s29] sm:$0xff] (%p30_p3), %v195_v0  ;;  %198 = vst [vmem:[%s159_s29 + $0x8] sm:$0xff] (%p30_p3), %v197_v1  ;;  %v201_v3 = vld [vmem:[%s161_s28 + $0x30] sm:$0xff] (%p30_p3) }
  0x13   : > { %200 = vst [vmem:[%s159_s29 + $0x10] sm:$0xff] (%p30_p3), %v199_v2  ;;  %202 = vst [vmem:[%s159_s29 + $0x18] sm:$0xff] (%p30_p3), %v201_v3 }
  0x15 PF: > { %p1354_p5 = scmp.ge.s32.totalorder %s1746_s17, 1  ;;  %p207_p6 = scmp.lt.s32.totalorder %s1746_s17, 3 }
  0x17   : > { %p208_p7 = pnand %p1354_p5, %p207_p6 }
  0x18   : > { %s214_s30 = sand.u32 (!%p208_p7), 1, %s1738_s15   ;;  %v1675_v4 = vld [vmem:[%s2069_s1] sm:$0xff] (!%p208_p7)   ;;  %vm529_vm0 = vcmask (!%p208_p7), 261120   ;;  %v1676_v11 = vld [vmem:[%s2069_s1 + $0x8] sm:$0xff] (!%p208_p7)   ;;  %v1677_v12 = vld [vmem:[%s2069_s1 + $0x10] sm:$0xff] (!%p208_p7)   ;;  %vm1750_vm1 = vmmov (!%p208_p7), 0  }
  0x19   : > { %211 = sbr.rel (%p208_p7) target bundleno = 686 (0x2ae), region = 70  ;;  %s1355_s7 = sshll.u32 (!%p208_p7), %s214_s30, 5  ;;  %1543 = vmatprep.mubr.msk.bf16.mxu0 (!%p208_p7), %vm529_vm0, %v1675_v4  ;;  %v1678_v13 = vld [vmem:[%s2069_s1 + $0x18] sm:$0xff] (!%p208_p7)   ;;  %v1679_v14 = vld [vmem:[%s2069_s1 + $0x20] sm:$0xff] (!%p208_p7)   ;;  %v1680_v15 = vld [vmem:[%s2069_s1 + $0x28] sm:$0xff] (!%p208_p7)  }
  0x1a   : > { %s216_s8 = scalar_lea.vmem (!%p208_p7), [#allocation2], %s1355_s7  ;;  %v1681_v16 = vld [vmem:[%s2069_s1 + $0x30] sm:$0xff] (!%p208_p7)   ;;  %v1682_v17 = vld [vmem:[%s2069_s1 + $0x38] sm:$0xff] (!%p208_p7)   ;;  %v1707_v20 = vld [vmem:[%s2069_s1 + $0x100] sm:$0xff] (!%p208_p7)   ;;  %p238_p8 = scmp.lt.s32.totalorder (!%p208_p7), %s1348_s18, 1 }
  0x1b   : > { %v243_v5 = vld [vmem:[%s216_s8] sm:$0xff] (!%p208_p7)  ;;  %v244_v6 = vld [vmem:[%s216_s8 + $0x8] sm:$0xff] (!%p208_p7)  ;;  %v245_v7 = vld [vmem:[%s216_s8 + $0x10] sm:$0xff] (!%p208_p7) }
  0x1c   : > { %v247_v8 = vpack.c.bf16 (!%p208_p7), %v244_v6, %v243_v5  ;;  %v246_v9 = vld [vmem:[%s216_s8 + $0x18] sm:$0xff] (!%p208_p7)  ;;  %v1705_v18 = vld [vmem:[%s2069_s1 + $0xf0] sm:$0xff] (!%p208_p7)   ;;  %v1683_v21 = vld [vmem:[%s2069_s1 + $0x40] sm:$0xff] (!%p208_p7)  }
  0x1d   : > { %v248_v10 = vpack.c.bf16 (!%p208_p7), %v246_v9, %v245_v7  ;;  %v1706_v19 = vld [vmem:[%s2069_s1 + $0xf8] sm:$0xff] (!%p208_p7)   ;;  %1603 = vmatprep.mubr.msk.bf16.mxu1 (!%p208_p7), %vm529_vm0, %v1705_v18  ;;  %v1708_v22 = vld [vmem:[%s2069_s1 + $0x108] sm:$0xff] (!%p208_p7)   ;;  %v1709_v23 = vld [vmem:[%s2069_s1 + $0x110] sm:$0xff] (!%p208_p7)  }
  0x1e   : > { %1539 = vmatprep.subr.bf16.mxu0 (!%p208_p7), %v247_v8  ;;  %1643 = vmatprep.subr.bf16.mxu1 (!%p208_p7), %v247_v8  ;;  %v1684_v24 = vld [vmem:[%s2069_s1 + $0x48] sm:$0xff] (!%p208_p7)   ;;  %v1685_v25 = vld [vmem:[%s2069_s1 + $0x50] sm:$0xff] (!%p208_p7)   ;;  %v1710_v26 = vld [vmem:[%s2069_s1 + $0x118] sm:$0xff] (!%p208_p7)  }
  0x1f   : > { %1540 = vmatpush3.bf16.msra.mxu0 (!%p208_p7), %v247_v8  ;;  %1645 = vmatpush3.bf16.msra.mxu1 (!%p208_p7), %v247_v8  ;;  %v1711_v27 = vld [vmem:[%s2069_s1 + $0x120] sm:$0xff] (!%p208_p7)   ;;  %v1686_v28 = vld [vmem:[%s2069_s1 + $0x58] sm:$0xff] (!%p208_p7)   ;;  %v1712_v30 = vld [vmem:[%s2069_s1 + $0x128] sm:$0xff] (!%p208_p7)  }
  0x20   : > { %1541 = vmatprep.subr.bf16.mxu0 %v248_v10  ;;  %1644 = vmatprep.subr.bf16.mxu1 %v248_v10  ;;  %v1687_v29 = vld [vmem:[%s2069_s1 + $0x60] sm:$0xff]   ;;  %v1713_v31 = vld [vmem:[%s2069_s1 + $0x130] sm:$0xff]   ;;  %v1688_v32 = vld [vmem:[%s2069_s1 + $0x68] sm:$0xff]   ;;  %s2077_s18 = smov (!%p238_p8, %s1348_s18), 1 }
  0x21   : > { %v1689_v33 = vld [vmem:[%s2069_s1 + $0x70] sm:$0xff]   ;;  %v1714_v34 = vld [vmem:[%s2069_s1 + $0x138] sm:$0xff]   ;;  %v1691_v36 = vld [vmem:[%s2069_s1 + $0x80] sm:$0xff]   ;;  %s1356_s11 = sshll.u32 %s2077_s18, 2 }
  0x22   : > { %v1690_v35 = vld [vmem:[%s2069_s1 + $0x78] sm:$0xff]   ;;  %v1692_v37 = vld [vmem:[%s2069_s1 + $0x88] sm:$0xff]   ;;  %v1693_v38 = vld [vmem:[%s2069_s1 + $0x90] sm:$0xff]   ;;  %s241_s14 = scalar_lea.vmem %s2072_s4, %s1356_s11 }
  0x23   : > { %1542 = vmatpush3.bf16.msra.mxu0 %v248_v10  ;;  %1646 = vmatpush3.bf16.msra.mxu1 %v248_v10  ;;  %v1694_v39 = vld [vmem:[%s2069_s1 + $0x98] sm:$0xff]   ;;  %v1695_v40 = vld [vmem:[%s2069_s1 + $0xa0] sm:$0xff]   ;;  %v1696_v41 = vld [vmem:[%s2069_s1 + $0xa8] sm:$0xff]  }
  0x24   : > { %v1697_v42 = vld [vmem:[%s2069_s1 + $0xb0] sm:$0xff]   ;;  %v1698_v43 = vld [vmem:[%s2069_s1 + $0xb8] sm:$0xff]   ;;  %v1699_v44 = vld [vmem:[%s2069_s1 + $0xc0] sm:$0xff]  }
  0x25   : > { %v1700_v45 = vld [vmem:[%s2069_s1 + $0xc8] sm:$0xff]   ;;  %v1701_v46 = vld [vmem:[%s2069_s1 + $0xd0] sm:$0xff]   ;;  %v1702_v47 = vld [vmem:[%s2069_s1 + $0xd8] sm:$0xff]  }
  0x26   : > { %1544 = vmatmul.mubr.msk.bf16.vlgmr.msra.gmra.mrb[0].mxu0 %vm529_vm0, %v1676_v11  ;;  %1604 = vmatmul.mubr.msk.bf16.vlgmr.msra.gmra.mrb[0].mxu1 %vm529_vm0, %v1706_v19  ;;  %v1703_v48 = vld [vmem:[%s2069_s1 + $0xe0] sm:$0xff]   ;;  %v1704_v49 = vld [vmem:[%s2069_s1 + $0xe8] sm:$0xff]  }
  0x27   : > { %1547 = vmatprep.mubr.msk.bf16.mxu0 %vm529_vm0, %v1677_v12  ;;  %1607 = vmatprep.mubr.msk.bf16.mxu1 %vm529_vm0, %v1707_v20  ;;  %v1976_v50 = vld [vmem:[%s2070_s2] sm:$0xff] }
  0x28   : > { %v1438_v51 = vcombine.high %v1976_v50, %v1976_v50 }
  0x2e   : > { %1548 = vmatmul.mubr.msk.bf16.gmra.mrb[4].mxu0 %vm529_vm0, %v1678_v13  ;;  %1608 = vmatmul.mubr.msk.bf16.gmra.mrb[4].mxu1 %vm529_vm0, %v1708_v22 }
  0x2f   : > { %1551 = vmatprep.mubr.msk.bf16.mxu0 %vm529_vm0, %v1679_v14  ;;  %1611 = vmatprep.mubr.msk.bf16.mxu1 %vm529_vm0, %v1709_v23 }
  0x36   : > { %1552 = vmatmul.mubr.msk.bf16.gmra.mrb[8].mxu0 %vm529_vm0, %v1680_v15  ;;  %1612 = vmatmul.mubr.msk.bf16.gmra.mrb[8].mxu1 %vm529_vm0, %v1710_v26 }
  0x37   : > { %1555 = vmatprep.mubr.msk.bf16.mxu0 %vm529_vm0, %v1681_v16  ;;  %1615 = vmatprep.mubr.msk.bf16.mxu1 %vm529_vm0, %v1711_v27 }
  0x3e   : > { %1556 = vmatmul.mubr.msk.bf16.gmra.mrb[12].mxu0 %vm529_vm0, %v1682_v17  ;;  %1616 = vmatmul.mubr.msk.bf16.gmra.mrb[12].mxu1 %vm529_vm0, %v1712_v30 }
  0x3f   : > { %1559 = vmatprep.mubr.msk.bf16.mxu0 %vm529_vm0, %v1683_v21  ;;  %1619 = vmatprep.mubr.msk.bf16.mxu1 %vm529_vm0, %v1713_v31 }
  0x46   : > { %1560 = vmatmul.mubr.msk.bf16.gmra.mrb[16].mxu0 %vm529_vm0, %v1684_v24  ;;  %1620 = vmatmul.mubr.msk.bf16.gmra.mrb[16].mxu1 %vm529_vm0, %v1714_v34 }
  0x47   : > { %1563 = vmatprep.mubr.msk.bf16.mxu0 %vm529_vm0, %v1685_v25  ;;  %1182 = vmatprep.mubr.bf16.mxu1 %v1438_v51 }
  0x4e   : > { %1564 = vmatmul.mubr.msk.bf16.gmra.mrb[20].mxu0 %vm529_vm0, %v1686_v28 }
  0x4f   : > { %1567 = vmatprep.mubr.msk.bf16.mxu0 %vm529_vm0, %v1687_v29 }
  0x56   : > { %1568 = vmatmul.mubr.msk.bf16.gmra.mrb[24].mxu0 %vm529_vm0, %v1688_v32 }
  0x57   : > { %1571 = vmatprep.mubr.msk.bf16.mxu0 %vm529_vm0, %v1689_v33 }
  0x5e   : > { %1572 = vmatmul.mubr.msk.bf16.gmra.mrb[28].mxu0 %vm529_vm0, %v1690_v35 }
  0x5f   : > { %1575 = vmatprep.mubr.msk.bf16.mxu0 %vm529_vm0, %v1691_v36 }
  0x66   : > { %1576 = vmatmul.mubr.msk.bf16.gmra.mrb[32].mxu0 %vm529_vm0, %v1692_v37 }
  0x67   : > { %1579 = vmatprep.mubr.msk.bf16.mxu0 %vm529_vm0, %v1693_v38 }
  0x6e   : > { %1580 = vmatmul.mubr.msk.bf16.gmra.mrb[36].mxu0 %vm529_vm0, %v1694_v39 }
  0x6f   : > { %1583 = vmatprep.mubr.msk.bf16.mxu0 %vm529_vm0, %v1695_v40 }
  0x76   : > { %1584 = vmatmul.mubr.msk.bf16.gmra.mrb[40].mxu0 %vm529_vm0, %v1696_v41 }
  0x77   : > { %1587 = vmatprep.mubr.msk.bf16.mxu0 %vm529_vm0, %v1697_v42 }
  0x7e   : > { %1588 = vmatmul.mubr.msk.bf16.gmra.mrb[44].mxu0 %vm529_vm0, %v1698_v43 }
  0x7f   : > { %1591 = vmatprep.mubr.msk.bf16.mxu0 %vm529_vm0, %v1699_v44 }
  0x86   : > { %1592 = vmatmul.mubr.msk.bf16.gmra.mrb[48].mxu0 %vm529_vm0, %v1700_v45 }
  0x87   : > { %1595 = vmatprep.mubr.msk.bf16.mxu0 %vm529_vm0, %v1701_v46 }
  0x8e   : > { %1596 = vmatmul.mubr.msk.bf16.gmra.mrb[52].mxu0 %vm529_vm0, %v1702_v47 }
  0x8f   : > { %1599 = vmatprep.mubr.msk.bf16.mxu0 %vm529_vm0, %v1703_v48 }
  0x96   : > { %1600 = vmatmul.mubr.msk.bf16.gmra.mrb[56].mxu0 %vm529_vm0, %v1704_v49 }
  0xf9   : > { %v1545_v52 = vpop.f32.mrb[0].mxu0  ;;  %v1605_v17 = vpop.f32.mrb[0].mxu1 }
  0xfa   : > { %v684_v53 = vpop.f32.mrb[1].mxu0  ;;  %v1005_v55 = vmax.f32 %v1545_v52, 0.0  ;;  %v1065_v19 = vmax.f32 %v1605_v17, 0.0  ;;  %v924_v20 = vpop.f32.mrb[1].mxu1 }
  0xfb   : > { %v1546_v54 = vpop.f32.mrb[2].mxu0  ;;  %v1003_v58 = vmax.f32 %v684_v53, 0.0  ;;  %v1063_v21 = vmax.f32 %v924_v20, 0.0  ;;  %v1606_v22 = vpop.f32.mrb[2].mxu1 }
  0xfc   : > { %v1006_v56 = vmax.f32 %v1546_v54, 0.0  ;;  %v687_v57 = vpop.f32.mrb[3].mxu0  ;;  %v1066_v24 = vmax.f32 %v1606_v22, 0.0  ;;  %v927_v25 = vpop.f32.mrb[3].mxu1 }
  0xfd   : > { %v1004_v59 = vmax.f32 %v687_v57, 0.0  ;;  %v1064_v27 = vmax.f32 %v927_v25, 0.0 }
  0xfe   : > { %v1980_v60 = vpack.c.bf16 %v1006_v56, %v1005_v55  ;;  %v1992_v29 = vpack.c.bf16 %v1066_v24, %v1065_v19 }
  0xff   : > { %v1982_v61 = vpack.c.bf16 %v1004_v59, %v1003_v58  ;;  %v1994_v33 = vpack.c.bf16 %v1064_v27, %v1063_v21 }
 0x101   : > { %v1549_v62 = vpop.f32.mrb[4].mxu0  ;;  %v1609_v37 = vpop.f32.mrb[4].mxu1 }
 0x102   : > { %v700_v63 = vpop.f32.mrb[5].mxu0  ;;  %v1009_v1 = vmax.f32 %v1549_v62, 0.0  ;;  %v1069_v39 = vmax.f32 %v1609_v37, 0.0  ;;  %v940_v40 = vpop.f32.mrb[5].mxu1 }
 0x103   : > { %v1550_v0 = vpop.f32.mrb[6].mxu0  ;;  %v1007_v4 = vmax.f32 %v700_v63, 0.0  ;;  %v1067_v41 = vmax.f32 %v940_v40, 0.0  ;;  %v1610_v42 = vpop.f32.mrb[6].mxu1 }
 0x104   : > { %v1010_v2 = vmax.f32 %v1550_v0, 0.0  ;;  %v703_v3 = vpop.f32.mrb[7].mxu0  ;;  %v1070_v44 = vmax.f32 %v1610_v42, 0.0  ;;  %v943_v45 = vpop.f32.mrb[7].mxu1 }
 0x105   : > { %v1008_v5 = vmax.f32 %v703_v3, 0.0  ;;  %v1068_v47 = vmax.f32 %v943_v45, 0.0 }
 0x106   : > { %v1984_v6 = vpack.c.bf16 %v1010_v2, %v1009_v1  ;;  %v2000_v49 = vpack.c.bf16 %v1070_v44, %v1069_v39 }
 0x107   : > { %v1986_v7 = vpack.c.bf16 %v1008_v5, %v1007_v4  ;;  %v2002_v54 = vpack.c.bf16 %v1068_v47, %v1067_v41  ;;  %v1126_v5 = vld [vmem:[%s2071_s3] sm:$0xff] }
 0x109   : > { %v1553_v8 = vpop.f32.mrb[8].mxu0  ;;  %v1613_v58 = vpop.f32.mrb[8].mxu1 }
 0x10a   : > { %v716_v9 = vpop.f32.mrb[9].mxu0  ;;  %v1013_v11 = vmax.f32 %v1553_v8, 0.0  ;;  %v1073_v62 = vmax.f32 %v1613_v58, 0.0  ;;  %v956_v63 = vpop.f32.mrb[9].mxu1 }
 0x10b   : > { %v1554_v10 = vpop.f32.mrb[10].mxu0  ;;  %v1011_v14 = vmax.f32 %v716_v9, 0.0  ;;  %v1071_v0 = vmax.f32 %v956_v63, 0.0  ;;  %v1614_v1 = vpop.f32.mrb[10].mxu1 }
 0x10c   : > { %v1014_v12 = vmax.f32 %v1554_v10, 0.0  ;;  %v719_v13 = vpop.f32.mrb[11].mxu0  ;;  %v1074_v3 = vmax.f32 %v1614_v1, 0.0  ;;  %v959_v4 = vpop.f32.mrb[11].mxu1  ;;  %v1748_v10 = vmov 0  }
 0x10d   : > { %v1012_v15 = vmax.f32 %v719_v13, 0.0  ;;  %v1072_v9 = vmax.f32 %v959_v4, 0.0  ;;  %1674 = vset.pattern.permute.xlu0 %v1748_v10 }
 0x10e   : > { %v1988_v16 = vpack.c.bf16 %v1014_v12, %v1013_v11  ;;  %v2008_v12 = vpack.c.bf16 %v1074_v3, %v1073_v62  ;;  %1129 = vperm.xlu0 %1674, %v1126_v5  }
 0x10f   : > { %v1990_v18 = vpack.c.bf16 %v1012_v15, %v1011_v14  ;;  %v2010_v17 = vpack.c.bf16 %v1072_v9, %v1071_v0 }
 0x111   : > { %v1557_v23 = vpop.f32.mrb[12].mxu0  ;;  %v1617_v22 = vpop.f32.mrb[12].mxu1 }
 0x112   : > { %v732_v26 = vpop.f32.mrb[13].mxu0  ;;  %v1017_v30 = vmax.f32 %v1557_v23, 0.0  ;;  %v1077_v23 = vmax.f32 %v1617_v22, 0.0  ;;  %v972_v24 = vpop.f32.mrb[13].mxu1 }
 0x113   : > { %v1558_v28 = vpop.f32.mrb[14].mxu0  ;;  %v1015_v34 = vmax.f32 %v732_v26, 0.0  ;;  %v1075_v25 = vmax.f32 %v972_v24, 0.0  ;;  %v1618_v26 = vpop.f32.mrb[14].mxu1 }
 0x114   : > { %v1018_v31 = vmax.f32 %v1558_v28, 0.0  ;;  %v735_v32 = vpop.f32.mrb[15].mxu0  ;;  %v1078_v28 = vmax.f32 %v1618_v26, 0.0 }
 0x115   : > { %v1016_v35 = vmax.f32 %v735_v32, 0.0 }
 0x116   : > { %v1996_v36 = vpack.c.bf16 %v1018_v31, %v1017_v30  ;;  %v975_v30 = vpop.f32.mrb[15].mxu1 }
 0x117   : > { %v1998_v38 = vpack.c.bf16 %v1016_v35, %v1015_v34  ;;  %v1076_v32 = vmax.f32 %v975_v30, 0.0  ;;  %v2014_v35 = vpack.c.bf16 %v1078_v28, %v1077_v23 }
 0x119   : > { %v1561_v43 = vpop.f32.mrb[16].mxu0  ;;  %v2016_v40 = vpack.c.bf16 %v1076_v32, %v1075_v25  ;;  %v1621_v44 = vpop.f32.mrb[16].mxu1 }
 0x11a   : > { %v748_v46 = vpop.f32.mrb[17].mxu0  ;;  %v1021_v51 = vmax.f32 %v1561_v43, 0.0  ;;  %v988_v47 = vpop.f32.mrb[17].mxu1 }
 0x11b   : > { %v1562_v48 = vpop.f32.mrb[18].mxu0  ;;  %v1019_v55 = vmax.f32 %v748_v46, 0.0  ;;  %v1081_v46 = vmax.f32 %v1621_v44, 0.0 }
 0x11c   : > { %v1022_v52 = vmax.f32 %v1562_v48, 0.0  ;;  %v751_v53 = vpop.f32.mrb[19].mxu0  ;;  %v1622_v48 = vpop.f32.mrb[18].mxu1 }
 0x11d   : > { %v1020_v56 = vmax.f32 %v751_v53, 0.0  ;;  %v991_v53 = vpop.f32.mrb[19].mxu1 }
 0x11e   : > { %v1095_v57 = vpack.c.bf16 %v1022_v52, %v1021_v51  ;;  %v1082_v52 = vmax.f32 %v1622_v48, 0.0 }
 0x11f   : > { %v1094_v59 = vpack.c.bf16 %v1020_v56, %v1019_v55  ;;  %v1080_v56 = vmax.f32 %v991_v53, 0.0 }
 0x120   : > { %v2020_v58 = vpack.c.bf16 %v1082_v52, %v1081_v46 }
 0x121   : > { %v1565_v2 = vpop.f32.mrb[20].mxu0  ;;  %1486 = vmatprep.subr.bf16.mxu1 %v1094_v59 }
 0x122   : > { %v764_v8 = vpop.f32.mrb[21].mxu0  ;;  %1487 = vmatpush3.bf16.msra.mxu1 %v1982_v61  ;;  %v1025_v13 = vmax.f32 %v1565_v2, 0.0 }
 0x123   : > { %v1566_v11 = vpop.f32.mrb[22].mxu0  ;;  %1488 = vmatprep.subr.bf16.mxu1 %v1095_v57  ;;  %v1023_v19 = vmax.f32 %v764_v8, 0.0  ;;  %v2029_v8 = vld [vmem:[%s2070_s2 + $0x8] sm:$0xff] }
 0x124   : > { %v1026_v14 = vmax.f32 %v1566_v11, 0.0  ;;  %v767_v15 = vpop.f32.mrb[23].mxu0 }
 0x125   : > { %v1024_v20 = vmax.f32 %v767_v15, 0.0 }
 0x126   : > { %v1097_v21 = vpack.c.bf16 %v1026_v14, %v1025_v13  ;;  %1489 = vmatpush3.bf16.msra.mxu1 %v1980_v60 }
 0x127   : > { %v1096_v61 = vpack.c.bf16 %v1024_v20, %v1023_v19 }
 0x129   : > { %v1569_v27 = vpop.f32.mrb[24].mxu0  ;;  %1490 = vmatprep.subr.bf16.mxu1 %v1096_v61 }
 0x12a   : > { %v780_v31 = vpop.f32.mrb[25].mxu0  ;;  %1491 = vmatpush3.bf16.msra.mxu1 %v1986_v7  ;;  %v1029_v37 = vmax.f32 %v1569_v27, 0.0  ;;  %v1079_v7 = vmax.f32 %v988_v47, 0.0 }
 0x12b   : > { %v1570_v34 = vpop.f32.mrb[26].mxu0  ;;  %1492 = vmatprep.subr.bf16.mxu1 %v1097_v21  ;;  %v1027_v41 = vmax.f32 %v780_v31, 0.0 }
 0x12c   : > { %v1030_v60 = vmax.f32 %v1570_v34, 0.0  ;;  %v783_v39 = vpop.f32.mrb[27].mxu0  ;;  %v2022_v63 = vpack.c.bf16 %v1080_v56, %v1079_v7 }
 0x12d   : > { %v1028_v42 = vmax.f32 %v783_v39, 0.0 }
 0x12e   : > { %v1099_v43 = vpack.c.bf16 %v1030_v60, %v1029_v37  ;;  %1493 = vmatpush3.bf16.msra.mxu1 %v1984_v6 }
 0x12f   : > { %v1098_v45 = vpack.c.bf16 %v1028_v42, %v1027_v41 }
 0x131   : > { %v1573_v51 = vpop.f32.mrb[28].mxu0  ;;  %1494 = vmatprep.subr.bf16.mxu1 %v1098_v45 }
 0x132   : > { %v796_v55 = vpop.f32.mrb[29].mxu0  ;;  %1495 = vmatpush3.bf16.msra.mxu1 %v1990_v18  ;;  %v1033_v59 = vmax.f32 %v1573_v51, 0.0 }
 0x133   : > { %v1574_v57 = vpop.f32.mrb[30].mxu0  ;;  %1496 = vmatprep.subr.bf16.mxu1 %v1099_v43  ;;  %v1031_v0 = vmax.f32 %v796_v55, 0.0 }
 0x134   : > { %v1034_v6 = vmax.f32 %v1574_v57, 0.0  ;;  %v799_v62 = vpop.f32.mrb[31].mxu0 }
 0x135   : > { %v1032_v1 = vmax.f32 %v799_v62, 0.0 }
 0x136   : > { %v1101_v2 = vpack.c.bf16 %v1034_v6, %v1033_v59  ;;  %1497 = vmatpush3.bf16.msra.mxu1 %v1988_v16  ;;  %v1437_v16 = vcombine.low %v1976_v50, %v1976_v50 }
 0x137   : > { %v1100_v3 = vpack.c.bf16 %v1032_v1, %v1031_v0 }
 0x139   : > { %v1577_v4 = vpop.f32.mrb[32].mxu0  ;;  %1498 = vmatprep.subr.bf16.mxu1 %v1100_v3 }
 0x13a   : > { %v812_v5 = vpop.f32.mrb[33].mxu0  ;;  %1499 = vmatpush3.bf16.msra.mxu1 %v1998_v38  ;;  %v1037_v9 = vmax.f32 %v1577_v4, 0.0  ;;  %v1440_v38 = vcombine.high %v2029_v8, %v2029_v8 }
 0x13b   : > { %v1578_v18 = vpop.f32.mrb[34].mxu0  ;;  %1500 = vmatprep.subr.bf16.mxu1 %v1101_v2  ;;  %v1035_v13 = vmax.f32 %v812_v5, 0.0 }
 0x13c   : > { %v1038_v10 = vmax.f32 %v1578_v18, 0.0  ;;  %v815_v11 = vpop.f32.mrb[35].mxu0 }
 0x13d   : > { %v1036_v14 = vmax.f32 %v815_v11, 0.0 }
 0x13e   : > { %v1103_v15 = vpack.c.bf16 %v1038_v10, %v1037_v9  ;;  %1501 = vmatpush3.bf16.msra.mxu1 %v1996_v36 }
 0x13f   : > { %v1102_v19 = vpack.c.bf16 %v1036_v14, %v1035_v13 }
 0x141   : > { %v1581_v20 = vpop.f32.mrb[36].mxu0  ;;  %1183 = vmatmul.mubr.bf16.vlgmr.msra.gmra.mrb[20].mxu1 %v1437_v16 }
 0x142   : > { %v828_v21 = vpop.f32.mrb[37].mxu0  ;;  %1222 = vmatprep.mubr.bf16.mxu1 %v1440_v38  ;;  %v1041_v61 = vmax.f32 %v1581_v20, 0.0 }
 0x143   : > { %v1582_v22 = vpop.f32.mrb[38].mxu0  ;;  %v1039_v25 = vmax.f32 %v828_v21, 0.0 }
 0x144   : > { %v1042_v23 = vmax.f32 %v1582_v22, 0.0  ;;  %v831_v24 = vpop.f32.mrb[39].mxu0 }
 0x145   : > { %v1040_v26 = vmax.f32 %v831_v24, 0.0 }
 0x146   : > { %v1105_v27 = vpack.c.bf16 %v1042_v23, %v1041_v61 }
 0x147   : > { %v1104_v28 = vpack.c.bf16 %v1040_v26, %v1039_v25 }
 0x149   : > { %v1585_v50 = vpop.f32.mrb[40].mxu0 }
 0x14a   : > { %v844_v30 = vpop.f32.mrb[41].mxu0  ;;  %v1045_v36 = vmax.f32 %v1585_v50, 0.0 }
 0x14b   : > { %v1586_v31 = vpop.f32.mrb[42].mxu0  ;;  %v1043_v37 = vmax.f32 %v844_v30, 0.0 }
 0x14c   : > { %v1046_v32 = vmax.f32 %v1586_v31, 0.0  ;;  %v847_v34 = vpop.f32.mrb[43].mxu0 }
 0x14d   : > { %v1044_v60 = vmax.f32 %v847_v34, 0.0 }
 0x14e   : > { %v1107_v39 = vpack.c.bf16 %v1046_v32, %v1045_v36 }
 0x14f   : > { %v1106_v41 = vpack.c.bf16 %v1044_v60, %v1043_v37 }
 0x151   : > { %v1589_v42 = vpop.f32.mrb[44].mxu0 }
 0x152   : > { %v860_v43 = vpop.f32.mrb[45].mxu0  ;;  %v1049_v45 = vmax.f32 %v1589_v42, 0.0 }
 0x153   : > { %v1590_v44 = vpop.f32.mrb[46].mxu0  ;;  %v1047_v7 = vmax.f32 %v860_v43, 0.0 }
 0x154   : > { %v1050_v46 = vmax.f32 %v1590_v44, 0.0  ;;  %v863_v47 = vpop.f32.mrb[47].mxu0 }
 0x155   : > { %v1048_v48 = vmax.f32 %v863_v47, 0.0 }
 0x156   : > { %v1109_v51 = vpack.c.bf16 %v1050_v46, %v1049_v45 }
 0x157   : > { %v1108_v52 = vpack.c.bf16 %v1048_v48, %v1047_v7 }
 0x159   : > { %v1593_v53 = vpop.f32.mrb[48].mxu0 }
 0x15a   : > { %v876_v55 = vpop.f32.mrb[49].mxu0  ;;  %v1053_v57 = vmax.f32 %v1593_v53, 0.0 }
 0x15b   : > { %v1594_v56 = vpop.f32.mrb[50].mxu0  ;;  %v1051_v62 = vmax.f32 %v876_v55, 0.0 }
 0x15c   : > { %v1054_v59 = vmax.f32 %v1594_v56, 0.0  ;;  %v879_v6 = vpop.f32.mrb[51].mxu0 }
 0x15d   : > { %v1052_v0 = vmax.f32 %v879_v6, 0.0 }
 0x15e   : > { %v1111_v1 = vpack.c.bf16 %v1054_v59, %v1053_v57 }
 0x15f   : > { %v1110_v2 = vpack.c.bf16 %v1052_v0, %v1051_v62 }
 0x161   : > { %v1597_v3 = vpop.f32.mrb[52].mxu0  ;;  %1508 = vmatprep.subr.bf16.mxu1 %v1110_v2 }
 0x162   : > { %v892_v4 = vpop.f32.mrb[53].mxu0  ;;  %1509 = vmatpush3.bf16.msra.mxu1 %v1102_v19  ;;  %v1057_v18 = vmax.f32 %v1597_v3, 0.0 }
 0x163   : > { %v1598_v5 = vpop.f32.mrb[54].mxu0  ;;  %1510 = vmatprep.subr.bf16.mxu1 %v1111_v1  ;;  %v1055_v11 = vmax.f32 %v892_v4, 0.0 }
 0x164   : > { %v1058_v9 = vmax.f32 %v1598_v5, 0.0  ;;  %v895_v10 = vpop.f32.mrb[55].mxu0 }
 0x165   : > { %v1056_v13 = vmax.f32 %v895_v10, 0.0 }
 0x166   : > { %v1113_v14 = vpack.c.bf16 %v1058_v9, %v1057_v18  ;;  %1511 = vmatpush3.bf16.msra.mxu1 %v1103_v15  ;;  %v1439_v15 = vcombine.low %v2029_v8, %v2029_v8 }
 0x167   : > { %v1112_v16 = vpack.c.bf16 %v1056_v13, %v1055_v11 }
 0x169   : > { %v1601_v38 = vpop.f32.mrb[56].mxu0  ;;  %1512 = vmatprep.subr.bf16.mxu1 %v1112_v16 }
 0x16a   : > { %v908_v20 = vpop.f32.mrb[57].mxu0  ;;  %1513 = vmatpush3.bf16.msra.mxu1 %v1104_v28  ;;  %v1061_v22 = vmax.f32 %v1601_v38, 0.0  ;;  %v1749_v28 = vmov 0.0  }
 0x16b   : > { %v1602_v21 = vpop.f32.mrb[58].mxu0  ;;  %1514 = vmatprep.subr.bf16.mxu1 %v1113_v14  ;;  %v1059_v19 = vmax.f32 %v908_v20, 0.0 }
 0x16c   : > { %v1062_v61 = vmax.f32 %v1602_v21, 0.0  ;;  %v911_v23 = vpop.f32.mrb[59].mxu0 }
 0x16d   : > { %v1060_v24 = vmax.f32 %v911_v23, 0.0 }
 0x16e   : > { %v1115_v25 = vpack.c.bf16 %v1062_v61, %v1061_v22  ;;  %1515 = vmatpush3.bf16.msra.mxu1 %v1105_v27 }
 0x16f   : > { %v1114_v26 = vpack.c.bf16 %v1060_v24, %v1059_v19 }
 0x171   : > { %1516 = vmatprep.subr.bf16.mxu1 %v1114_v26 }
 0x172   : > { %1517 = vmatpush3.bf16.msra.mxu1 %v1106_v41 }
 0x173   : > { %1518 = vmatprep.subr.bf16.mxu1 %v1115_v25 }
 0x176   : > { %1519 = vmatpush3.bf16.msra.mxu1 %v1107_v39 }
 0x177   : > { %1520 = vmatprep.subr.bf16.mxu1 %v1994_v33 }
 0x17a   : > { %1521 = vmatpush3.bf16.msra.mxu1 %v1108_v52 }
 0x17b   : > { %1522 = vmatprep.subr.bf16.mxu1 %v1992_v29  ;;  %v1719_v29 = vld [vmem:[%s2070_s2 + $0x10] ss:$0 sps:$4 sm:$0xff]  }
 0x17e   : > { %1523 = vmatpush3.bf16.msra.mxu1 %v1109_v51 }
 0x17f   : > { %1623 = vmatprep.subr.bf16.mxu1 %v1749_v28 }
 0x181   : > { %1223 = vmatmul.mubr.bf16.vlgmr.msra.gmra.mrb[24].mxu1 %v1439_v15 }
 0x182   : > { %1624 = vmatpush3.bf16.msra.mxu1 %v2002_v54  ;;  %1639 = vmatprep.mubr.msk.bf16.mxu1 %vm1750_vm1, %v1749_v28 }
 0x183   : > { %1625 = vmatprep.subr.bf16.mxu1 %v1749_v28 }
 0x186   : > { %1626 = vmatpush3.bf16.msra.mxu1 %v2000_v49 }
 0x187   : > { %1627 = vmatprep.subr.bf16.mxu1 %v1749_v28 }
 0x18a   : > { %1628 = vmatpush3.bf16.msra.mxu1 %v2010_v17 }
 0x18b   : > { %1629 = vmatprep.subr.bf16.mxu1 %v1749_v28 }
 0x18e   : > { %1630 = vmatpush3.bf16.msra.mxu1 %v2008_v12 }
 0x18f   : > { %1631 = vmatprep.subr.bf16.mxu1 %v1749_v28 }
 0x192   : > { %1632 = vmatpush3.bf16.msra.mxu1 %v2016_v40  ;;  %v1130_v40 = vpop.permute.xlu0 %1129 }
 0x193   : > { %1633 = vmatprep.subr.bf16.mxu1 %v1749_v28 }
 0x196   : > { %1634 = vmatpush3.bf16.msra.mxu1 %v2014_v35 }
 0x197   : > { %1635 = vmatprep.subr.bf16.mxu1 %v1749_v28 }
 0x19a   : > { %1636 = vmatpush3.bf16.msra.mxu1 %v2022_v63 }
 0x19b   : > { %1637 = vmatprep.subr.bf16.mxu1 %v1749_v28 }
 0x19e   : > { %1638 = vmatpush3.bf16.msra.mxu1 %v2020_v58 }
 0x1a1   : > { %1640 = vmatmul.mubr.bf16.vlgmr.msra.gmra.mrb[28].mxu1 %v1719_v29 }
 0x214   : > { %v1502_v33 = vpop.f32.mrb[20].mxu1 }
 0x215   : > { %v1503_v49 = vpop.f32.mrb[21].mxu1 }
 0x216   : > { %v1504_v54 = vadd.f32 %v1503_v49, %v1502_v33  ;;  %v1505_v12 = vpop.f32.mrb[22].mxu1 }
 0x217   : > { %v1506_v17 = vpop.f32.mrb[23].mxu1 }
 0x218   : > { %v1185_v35 = vadd.f32 %v1504_v54, %v1130_v40 }
 0x254   : > { %v1524_v8 = vpop.f32.mrb[24].mxu1 }
 0x255   : > { %v1525_v27 = vpop.f32.mrb[25].mxu1 }
 0x256   : > { %v1526_v50 = vadd.f32 %v1525_v27, %v1524_v8  ;;  %v1527_v30 = vpop.f32.mrb[26].mxu1 }
 0x257   : > { %v1528_v63 = vpop.f32.mrb[27].mxu1 }
 0x258   : > { %v1225_v31 = vadd.f32 %v1526_v50, %v1185_v35 }
 0x274   : > { %v1264_v36 = vpop.f32.mrb[28].mxu1 }
 0x275   : > { %v1265_v32 = vadd.f32 %v1264_v36, %v1225_v31  ;;  %v1641_v34 = vpop.f32.mrb[29].mxu1 }
 0x276   : > { %v1267_v37 = vpop.f32.mrb[30].mxu1 }
 0x277   : > { %v1270_v60 = vrot.slane %v1265_v32, 4  ;;  %v1642_v58 = vpop.f32.mrb[31].mxu1 }
 0x279   : > { %v1271_v39 = vmax.f32 %v1265_v32, %v1270_v60 }
 0x27b   : > { %v1272_v41 = vrot.slane %v1271_v39, 2 }
 0x27d   : > { %v1273_v42 = vmax.f32 %v1271_v39, %v1272_v41 }
 0x27f   : > { %v1274_v43 = vrot.slane %v1273_v42, 1 }
 0x281   : > { %v1275_v44 = vmax.f32 %v1273_v42, %v1274_v43 }
 0x283   : > { %v1276_v45 = vsub.f32 %v1265_v32, %v1275_v44 }
 0x285   : > { %v1277_v46 = vmul.f32 1.442695, %v1276_v45 }
 0x287   : > { %1720 = vpow2.f32 %v1277_v46 }
 0x291   : > { %v1721_v47 = vpop.eup %1720 }
 0x292   : > { %v1279_v7 = vrot.slane %v1721_v47, 4 }
 0x294   : > { %v1280_v48 = vadd.f32 %v1721_v47, %v1279_v7 }
 0x296   : > { %v1281_v51 = vrot.slane %v1280_v48, 2 }
 0x298   : > { %v1282_v52 = vadd.f32 %v1281_v51, %v1280_v48 }
 0x29a   : > { %v1283_v53 = vrot.slane %v1282_v52, 1 }
 0x29c   : > { %v1284_v55 = vadd.f32 %v1283_v53, %v1282_v52 }
 0x29e   : > { %1722 = vrcp.f32 %v1284_v55 }
 0x2a8   : > { %v1723_v56 = vpop.eup %1722 }
 0x2a9   : > { %v1286_v57 = vmul.f32 %v1723_v56, %v1721_v47 }
 0x2ab   : > { %v1287_v59 = vpack.c.bf16 %v1286_v57, %v1286_v57 }
 0x2ad   : > { %1288 = vst [vmem:[%s241_s14] sm:$0xf] %v1287_v59 }
 0x2ae PF: > { %p11_p9 = scmp.ge.s32.totalorder %s1793_s19, 4   ;;  %s2073_s15 = smov %s1742_s16 }
 0x2af   : > { %s2074_s16 = smov %s1802_s22  ;;  %s2075_s17 = smov %s1793_s19 }
 0x2b0   :  { %13 = sbr.rel (!%p11_p9) target bundleno = 2 (0x2), region = 109 }

</bundles_post_ra>
